<compile_context>
chip_gen: v7x
topology: tpu7x:2x2x1
jax: 0.10.0
libtpu: 0.0.40
codegen_flags: <defaults>
</compile_context>

<pallas_src>
import functools

import jax
import jax.numpy as jnp
from jax.experimental import pallas as pl
from jax.experimental.pallas import tpu as pltpu


def _super_reg_kernel(*refs, inv_tau, scaled_target, use_target, add_noise):
    """Refs (all VMEM, f32):
         add_noise=True : w_ref (P,A), noise_ref (K,2,P,A), costs_ref (2,P,A), out_ref (K,1)
         add_noise=False: w_ref (P,A),                       costs_ref (2,P,A), out_ref (1,1)
       costs slab 0 = stable_alpha * params_count / params_max
       costs slab 1 = target_gamma * params_count
    """
    if add_noise:
        w_ref, noise_ref, costs_ref, out_ref = refs
    else:
        w_ref, costs_ref, out_ref = refs

    costs = costs_ref[...]                                            # (2, P, A)

    if add_noise:
        # K samples x {stable, target} independent gumbel draws.
        logits = (w_ref[...][None, None, :, :]
                  + noise_ref[...]) * jnp.float32(inv_tau)            # (K, 2, P, A)
    else:
        # Deterministic path: ONE (P, A) softmax reused for both terms.
        logits = (w_ref[...] * jnp.float32(inv_tau))[None, None, :, :]  # (1, 1, P, A)

    # One stacked softmax chain over the last axis.
    m = jnp.max(logits, axis=-1, keepdims=True)
    e = jnp.exp(logits - m)
    gs = e / jnp.sum(e, axis=-1, keepdims=True)

    weighted = gs * costs[None, :, :, :]                              # (K, 2, P, A)
    sums = jnp.sum(jnp.sum(weighted, axis=-1), axis=-1)               # (K, 2)

    loss = sums[:, 0:1]                                               # (K, 1)  alpha * stable_cost
    if use_target:
        loss = loss + jnp.maximum(jnp.float32(0.0),
                                  sums[:, 1:2] - jnp.float32(scaled_target))
    out_ref[...] = loss                                               # full-tile (K, 1) store


def make_cost_table(params_count, *, stable_alpha=1.0, target_gamma=0.0):
    """Architecture / regularizer constants, computed ONCE at setup time:
         slab 0 = stable_alpha * params_count / params_max
         slab 1 = target_gamma * params_count
       Must be built with the SAME stable_alpha / target_gamma passed later to
       super_regularizer_loss."""
    params_count = jnp.asarray(params_count, dtype=jnp.float32)       # (P, A)
    params_max = jnp.max(params_count, axis=-1, keepdims=True)
    params_max = jnp.maximum(params_max, jnp.float32(1e-12))          # guard all-zero rows
    return jnp.stack([jnp.float32(stable_alpha) * params_count / params_max,
                      jnp.float32(target_gamma) * params_count], axis=0)   # (2, P, A)


def super_regularizer_loss(weights, cost_table, key=None, *,
                           type_cost="params", stable_alpha=1.0,
                           target=None, target_gamma=0.0, tau=1.0,
                           add_noise=True, num_samples=1):
    """
    weights:     (P, A) trainable branch logits (one SuperModule per row)
    cost_table:  (2, P, A) from make_cost_table (built with same alpha/gamma)
    key:         jax PRNG key for the gumbel noise (required if add_noise)
    num_samples: K independent gumbel evaluations batched in one pallas_call
    Returns a scalar f32 loss (num_samples == 1) or a (K,) vector of losses,
    each with the semantics of SuperRegularizer.forward.
    """
    # Same validity checks as SuperRegularizer.__init__.
    if stable_alpha == 0.0 and target is None:
        raise RuntimeError("No regularization selected. At least stable=True "
                           "or define target quantity.")
    if target_gamma > 0.0 and target is None:
        raise RuntimeError("target_gamma > 0, but no target quantity defined.")
    if target is not None and target_gamma == 0.0:
        raise RuntimeError("Target quantity defined but target_gamma is 0.")
    if type_cost != "params":
        # TODO(synk): 'flops' cost needs a flops profiler (ptflops); only 'params' implemented.
        raise ValueError("only type_cost='params' is implemented")
    if not add_noise and num_samples != 1:
        raise ValueError("num_samples > 1 only makes sense with add_noise=True")

    weights = jnp.asarray(weights, dtype=jnp.float32)
    cost_table = jnp.asarray(cost_table, dtype=jnp.float32)
    P, A = weights.shape
    use_target = target is not None

    kernel = functools.partial(
        _super_reg_kernel,
        inv_tau=1.0 / float(tau),
        scaled_target=(float(target_gamma) * float(target)) if use_target else 0.0,
        use_target=use_target,
        add_noise=bool(add_noise),
    )

    in_specs = [pl.BlockSpec(memory_space=pltpu.VMEM)]                # weights (P, A)
    args = [weights]
    if add_noise:
        if key is None:
            raise ValueError("add_noise=True requires a PRNG key")
        noise = jax.random.gumbel(key, (num_samples, 2, P, A), dtype=jnp.float32)
        in_specs.append(pl.BlockSpec(memory_space=pltpu.VMEM))        # noise (K, 2, P, A)
        args.append(noise)
    in_specs.append(pl.BlockSpec(memory_space=pltpu.VMEM))            # costs (2, P, A)
    args.append(cost_table)

    out = pl.pallas_call(
        kernel,
        out_shape=jax.ShapeDtypeStruct((num_samples, 1), jnp.float32),
        in_specs=in_specs,
        out_specs=pl.BlockSpec(memory_space=pltpu.VMEM),
    )(*args)
    return out[0, 0] if num_samples == 1 else out[:, 0]


def _reference_loss_no_noise(weights, params_count, *, stable_alpha, target,
                             target_gamma, tau):
    """Pure-JAX reference (raw, un-folded semantics) for the zero-gumbel path."""
    params_count = jnp.asarray(params_count, jnp.float32)
    params_max = jnp.maximum(jnp.max(params_count, axis=-1, keepdims=True), 1e-12)
    gs = jax.nn.softmax(jnp.asarray(weights, jnp.float32) / tau, axis=-1)
    loss = stable_alpha * jnp.sum(gs * (params_count / params_max))
    if target is not None:
        loss = loss + target_gamma * jnp.maximum(
            0.0, jnp.sum(gs * params_count) - target)
    return loss


if __name__ == "__main__":
    # Synthetic SuperNet: P SuperModules, each with A conv alternatives
    # (Conv2d(C, C, k), k in {1,3,5,7}) -> params = C*C*k*k + C.
    # Conceptual network input is NCHW x: (2, 4, 16, 16); the regularizer only
    # sees the branch logits + per-branch parameter counts.
    P, A, C = 3, 4, 4
    kernels = jnp.array([1.0, 3.0, 5.0, 7.0], dtype=jnp.float32)
    params_per_alt = C * C * kernels * kernels + C                    # (A,)
    params_count = jnp.tile(params_per_alt[None, :], (P, 1))          # (P, A)

    stable_alpha, target, target_gamma, tau = 1.0, 500.0, 0.1, 1.0
    cost_table = make_cost_table(params_count, stable_alpha=stable_alpha,
                                 target_gamma=target_gamma)           # hoisted, once

    key = jax.random.PRNGKey(0)
    k_w, k_noise = jax.random.split(key)
    # SuperModule.__init__ gives weights = 1/A; add a small deterministic perturbation.
    weights = (jnp.full((P, A), 1.0 / A, dtype=jnp.float32)
               + 0.01 * jax.random.normal(k_w, (P, A), dtype=jnp.float32))

    # 1) Exact check of the cost/softmax/relu/combine pipeline (noise disabled).
    loss_nn = super_regularizer_loss(
        weights, cost_table, k_noise, type_cost="params",
        stable_alpha=stable_alpha, target=target, target_gamma=target_gamma,
        tau=tau, add_noise=False)
    loss_nn = jax.block_until_ready(loss_nn)
    ref_nn = _reference_loss_no_noise(
        weights, params_count, stable_alpha=stable_alpha, target=target,
        target_gamma=target_gamma, tau=tau)
    assert jnp.allclose(loss_nn, ref_nn, rtol=1e-5, atol=1e-3), (loss_nn, ref_nn)

    # Analytic bounds (softmax weights are a convex combination per row).
    cost_norm = params_count / jnp.max(params_count, axis=-1, keepdims=True)
    lo = stable_alpha * float(jnp.sum(jnp.min(cost_norm, axis=-1)))
    hi = (stable_alpha * float(jnp.sum(jnp.max(cost_norm, axis=-1)))
          + target_gamma * max(0.0, float(jnp.sum(jnp.max(params_count, axis=-1))) - target))

    # 2) Full path with gumbel noise: determinism per key + finiteness + bounds.
    run = lambda: super_regularizer_loss(
        weights, cost_table, k_noise, type_cost="params",
        stable_alpha=stable_alpha, target=target, target_gamma=target_gamma,
        tau=tau, add_noise=True)
    loss1 = jax.block_until_ready(run())
    loss2 = jax.block_until_ready(run())
    assert bool(jnp.array_equal(loss1, loss2)), (loss1, loss2)
    assert bool(jnp.isfinite(loss1)), loss1
    assert lo - 1e-3 <= float(loss1) <= hi + 1e-3, (lo, float(loss1), hi)

    # 3) K-batched Monte-Carlo evaluations in ONE pallas_call (perf feedback).
    K = 4
    losses_k = super_regularizer_loss(
        weights, cost_table, k_noise, type_cost="params",
        stable_alpha=stable_alpha, target=target, target_gamma=target_gamma,
        tau=tau, add_noise=True, num_samples=K)
    losses_k = jax.block_until_ready(losses_k)
    assert losses_k.shape == (K,), losses_k.shape
    assert bool(jnp.all(jnp.isfinite(losses_k))), losses_k
    assert bool(jnp.all(losses_k >= lo - 1e-3)) and bool(jnp.all(losses_k <= hi + 1e-3)), (
        lo, losses_k, hi)

    print("KERNEL_OK")
</pallas_src>

<mosaic_0001>
module attributes {stable_mosaic.version = 11 : i64} {
  func.func @_super_reg_kernel(%arg0: memref<3x4xf32, #tpu.memory_space<vmem>>, %arg1: memref<2x3x4xf32, #tpu.memory_space<vmem>>, %arg2: memref<1x1xf32, #tpu.memory_space<vmem>>) attributes {dimension_semantics = [], scalar_prefetch = 0 : i64, scratch_operands = 0 : i64, tpu.core_type = #tpu.core_type<tc>} {
    %c0 = arith.constant 0 : index
    %c0_0 = arith.constant 0 : index
    %c0_1 = arith.constant 0 : index
    %0 = vector.load %arg1[%c0, %c0_0, %c0_1] : memref<2x3x4xf32, #tpu.memory_space<vmem>>, vector<2x3x4xf32>
    %c0_2 = arith.constant 0 : index
    %c0_3 = arith.constant 0 : index
    %1 = vector.load %arg0[%c0_2, %c0_3] : memref<3x4xf32, #tpu.memory_space<vmem>>, vector<3x4xf32>
    %cst = arith.constant 1.000000e+00 : f32
    %2 = vector.broadcast %cst : f32 to vector<3x4xf32>
    %3 = arith.mulf %1, %2 : vector<3x4xf32>
    %4 = vector.shape_cast %3 : vector<3x4xf32> to vector<1x1x3x4xf32>
    %cst_4 = arith.constant dense<0xFF800000> : vector<1x1x3xf32>
    %5 = vector.multi_reduction <maximumf>, %4, %cst_4 [3] : vector<1x1x3x4xf32> to vector<1x1x3xf32>
    %6 = vector.shape_cast %5 : vector<1x1x3xf32> to vector<1x1x3x1xf32>
    %7 = vector.broadcast %6 : vector<1x1x3x1xf32> to vector<1x1x3x4xf32>
    %8 = arith.subf %4, %7 : vector<1x1x3x4xf32>
    %9 = math.exp %8 : vector<1x1x3x4xf32>
    %cst_5 = arith.constant dense<0.000000e+00> : vector<1x1x3xf32>
    %10 = vector.multi_reduction <add>, %9, %cst_5 [3] : vector<1x1x3x4xf32> to vector<1x1x3xf32>
    %11 = vector.shape_cast %10 : vector<1x1x3xf32> to vector<1x1x3x1xf32>
    %12 = vector.broadcast %11 : vector<1x1x3x1xf32> to vector<1x1x3x4xf32>
    %13 = arith.divf %9, %12 : vector<1x1x3x4xf32>
    %14 = vector.shape_cast %0 : vector<2x3x4xf32> to vector<1x2x3x4xf32>
    %15 = vector.broadcast %13 : vector<1x1x3x4xf32> to vector<1x2x3x4xf32>
    %16 = arith.mulf %15, %14 : vector<1x2x3x4xf32>
    %cst_6 = arith.constant dense<0.000000e+00> : vector<1x2x3xf32>
    %17 = vector.multi_reduction <add>, %16, %cst_6 [3] : vector<1x2x3x4xf32> to vector<1x2x3xf32>
    %cst_7 = arith.constant dense<0.000000e+00> : vector<1x2xf32>
    %18 = vector.multi_reduction <add>, %17, %cst_7 [2] : vector<1x2x3xf32> to vector<1x2xf32>
    %19 = vector.extract_strided_slice %18 {offsets = [0, 0], sizes = [1, 1], strides = [1, 1]} : vector<1x2xf32> to vector<1x1xf32>
    %20 = vector.extract_strided_slice %18 {offsets = [0, 1], sizes = [1, 1], strides = [1, 1]} : vector<1x2xf32> to vector<1x1xf32>
    %cst_8 = arith.constant 5.000000e+01 : f32
    %21 = vector.broadcast %cst_8 : f32 to vector<1x1xf32>
    %22 = arith.subf %20, %21 : vector<1x1xf32>
    %cst_9 = arith.constant 0.000000e+00 : f32
    %23 = vector.broadcast %cst_9 : f32 to vector<1x1xf32>
    %24 = arith.maximumf %23, %22 : vector<1x1xf32>
    %25 = arith.addf %19, %24 : vector<1x1xf32>
    %c0_10 = arith.constant 0 : index
    %c0_11 = arith.constant 0 : index
    %26 = vector.load %arg2[%c0_10, %c0_11] : memref<1x1xf32, #tpu.memory_space<vmem>>, vector<1x1xf32>
    tpu.vector_store %arg2[%c0_10, %c0_11], %25 {strides = array<i32>} : memref<1x1xf32, #tpu.memory_space<vmem>>, vector<1x1xf32>,
    return
  }
}

</mosaic_0001>

<bundles_post_ra>
// kernel: tpu_custom_call.1
= control target key start
LH: loop header
LB: loop body
LE: loop exit
PB: predicated region body
PF: predicated region fallthrough
CT: control target
= control target key end

     0   :  { %vm15_vm0 = vcmask 26624   ;;  %s147_s0 = inlined_call_operand.vmem [shape: f32[3,4], index: 0, kind: input, shape index: {}]   ;;  %s148_s1 = inlined_call_operand.vmem [shape: f32[2,3,4], index: 1, kind: input, shape index: {}]   ;;  %s149_s2 = inlined_call_operand.hbm [shape: f32[1,1], index: 2, kind: output, shape index: {}]  }
   0x1   :  { %v14_v0 = vld [vmem:[%s147_s0] sm:$0x7] }
   0x2   :  { %7 = vsyncpa [#allocation3], 0  ;;  %v16_v1 = vsel %vm15_vm0, %v14_v0, -inf  ;;  %v12_v9 = vld [vmem:[%s148_s1] sm:$0x7]  ;;  %v37_v16 = vlaneseq  ;;  %vm47_vm1 = vcmask 1041409  }
   0x3   :  { %17 = vmax.xlane.f32.xlu0 %v16_v1  ;;  %v13_v11 = vld [vmem:[%s148_s1 + $0x4] sm:$0x7]  ;;  %vm50_vm2 = vcmask 17408   ;;  %s106_s1 = smov [#allocation2]   ;;  %vm60_vm3 = vcmask 0  }
   0x4   :  { %v38_v17 = vand.u32 127, %v37_v16  ;;  %v40_v18 = vshrl.u32 %v37_v16, 7  ;;  %s68_s14 = sshll.u32 %s106_s1, 4  ;;  %s69_s14 = int_to_ptr.vmem [resolvable:$true] %s68_s14 }
   0x5   :  { %s82_s15 = scalar_lea.vmem %s69_s14, 16  ;;  %s86_s16 = scalar_lea.vmem %s69_s14, 32 }
   0x6   :  { %v41_v20 = vsub.s32 %v38_v17, %v40_v18  ;;  %p83_p0 = scmp.ne.s32.totalorder %s69_s14, %s82_s15  ;;  %p87_p1 = scmp.lt.s32.totalorder %s69_s14, %s69_s14 }
   0x7   :  { %p88_p2 = scmp.lt.s32.totalorder %s86_s16, %s82_s15 }
   0x9   :  { %p89_p3 = por %p88_p2, %p87_p1 }
   0xb   :  { %p90_p4 = pnand %p89_p3, %p83_p0 }
  0x90   :  { %v18_v2 = vpop.xlane.xlu0 %17 }
  0x91   :  { %v19_v3 = vsub.f32 %v14_v0, %v18_v2 }
  0x93   :  { %v20_v4 = vmul.f32 1.442695, %v19_v3 }
  0x95   :  { %78 = vpow2.f32 %v20_v4 }
  0x9f   :  { %v79_v5 = vpop.eup %78 }
  0xa0   :  { %v22_v6 = vsel %vm15_vm0, %v79_v5, 0.0 }
  0xa1   :  { %23 = vadd.xlane.f32.xlu0 %v22_v6 }
 0x12e   :  { %v24_v7 = vpop.xlane.xlu0 %23 }
 0x12f   :  { %80 = vrcp.f32 %v24_v7 }
 0x139   :  { %v81_v8 = vpop.eup %80 }
 0x13a   :  { %v26_v10 = vmul.f32 %v81_v8, %v79_v5 }
 0x13c   :  { %v27_v12 = vmul.f32 %v26_v10, %v12_v9  ;;  %v28_v14 = vmul.f32 %v26_v10, %v13_v11 }
 0x13e   :  { %v29_v13 = vsel %vm15_vm0, %v27_v12, 0.0  ;;  %v32_v15 = vsel %vm15_vm0, %v28_v14, 0.0 }
 0x13f   :  { %30 = vadd.xlane.f32.xlu1 %v29_v13 }
 0x143   :  { %33 = vadd.xlane.f32.xlu1 %v32_v15 }
 0x1cc   :  { %v31_v19 = vpop.xlane.xlu1 %30 }
 0x1cd   :  { %v42_v22 = vrot.slane %v31_v19, %v41_v20 }
 0x1d0   :  { %v34_v21 = vpop.xlane.xlu1 %33 }
 0x1d1   :  { %v46_v23 = vrot.slane %v34_v21, %v41_v20 }
 0x1d3   :  { %v48_v24 = vsel %vm47_vm1, %v46_v23, %v42_v22 }
 0x1d4   :  { %v51_v25 = vsel %vm50_vm2, %v48_v24, 0.0 }
 0x1d5   :  { %52 = vadd.xlane.f32.xlu0 %v51_v25 }
 0x262   :  { %v53_v26 = vpop.xlane.xlu0 %52 }
 0x263   :  { %v76_v27 = vadd.f32 -50.0, %v53_v26 }
 0x265   :  { %v55_v28 = vmax.f32 %v76_v27, 0.0 }
 0x267   :  { %v57_v29 = vrot.slane %v55_v28, 1 }
 0x269   :  { %v59_v30 = vadd.f32 %v57_v29, %v53_v26 }
 0x26b   :  { %61 = vst.msk [vmem:[#allocation2] sm:$0x1] %vm60_vm3, %v59_v30 }
 0x26c   :  { %93 = shalt.err (!%p90_p4)
}
 0x26d   :  { %s94_s19 = scalar_lea.hbm %s149_s2, 16 }
 0x26e   :  { %p95_p5 = scmp.ne.s32.totalorder %s149_s2, %s94_s19  ;;  %p98_p6 = scmp.lt.u32.totalorder %s94_s19, %s149_s2 }
 0x270   :  { %p100_p7 = pnand %p98_p6, %p95_p5 }
 0x272   :  { %103 = shalt.err (!%p100_p7)
}
 0x273   :  { %71 = dma.vmem_to_hbm [thread:$0]  %s69_s14, 16, %s149_s2, [#allocation3]  }
 0x274   :  { %104 = dma.done.wait [#allocation3], 16  }
 0x275   :  { %105 = vsyncadd [#allocation3], 4294967280 }
 0x276   :  { %75 = vsyncpa [#allocation3], 1 }

</bundles_post_ra>
